<compile_context>
chip_gen: v6e
topology: v6e:2x2x1
jax: 0.10.0
libtpu: 0.0.40
codegen_flags: <defaults>
</compile_context>

<pallas_src>
import functools

import jax
import jax.numpy as jnp
from jax import lax
from jax.experimental import pallas as pl
from jax.experimental.pallas import tpu as pltpu

_LANES = 128


# ---------------------------------------------------------------------------
# Kernels
# ---------------------------------------------------------------------------
def _packed_layernorm_kernel(x_ref, seg_ref, *rest, eps, n, affine):
    """Lane-dense kernel: each 128-lane row holds 128//n samples of n features.

    seg_ref is a (128,128) block-diagonal ones matrix: x @ seg produces, at
    every lane, the sum over that lane's sample segment (reduce + broadcast in
    a single MXU op; the MXU is otherwise idle in this mem-bound kernel).
    """
    if affine:
        gamma_ref, beta_ref, o_ref = rest
    else:
        (o_ref,) = rest

    x = x_ref[...].astype(jnp.float32)          # (TR, 128), lane-dense
    seg = seg_ref[...]                          # (128, 128) f32, VMEM-resident

    # Per-sample sum broadcast across the sample's lanes (exact f32 matmul).
    sums = jnp.dot(x, seg, preferred_element_type=jnp.float32,
                   precision=lax.Precision.HIGHEST)
    mean = sums * (1.0 / n)                     # constant multiply, no divide
    d = x - mean
    sq = jnp.dot(d * d, seg, preferred_element_type=jnp.float32,
                 precision=lax.Precision.HIGHEST)
    var = sq * (1.0 / (n - 1))                  # unbiased (torch ddof=1)
    # eps is added to std (module semantics), so sqrt + exact reciprocal.
    inv = pl.reciprocal(jnp.sqrt(var) + jnp.float32(eps), approx=False)
    y = d * inv
    if affine:
        y = gamma_ref[...].astype(jnp.float32) * y + beta_ref[...].astype(jnp.float32)
    o_ref[...] = y.astype(o_ref.dtype)          # unmasked 128-lane stores


def _rowtiled_layernorm_kernel(x_ref, *rest, eps, affine):
    """Generic fallback (feature width does not divide 128 lanes)."""
    if affine:
        gamma_ref, beta_ref, o_ref = rest
    else:
        (o_ref,) = rest

    x = x_ref[...].astype(jnp.float32)          # (TB, F)
    n = x.shape[1]
    mean = jnp.mean(x, axis=1, keepdims=True)
    d = x - mean
    var = jnp.sum(d * d, axis=1, keepdims=True) * (1.0 / (n - 1))
    # TODO(synk): stats here are lane-width-1; compact them before the
    # sqrt/reciprocal if this fallback ever becomes hot.
    inv = pl.reciprocal(jnp.sqrt(var) + jnp.float32(eps), approx=False)
    y = d * inv
    if affine:
        y = gamma_ref[...].astype(jnp.float32) * y + beta_ref[...].astype(jnp.float32)
    o_ref[...] = y.astype(o_ref.dtype)


# ---------------------------------------------------------------------------
# Tiling
# ---------------------------------------------------------------------------
def _pick_tile_rows(R, row_bytes, *, tile_budget_bytes=2 << 20):
    """Rows per grid step.

    ~2 MiB per tile amortizes the ~0.35us per-grid-step overhead on every
    generation while keeping double-buffered in+out traffic (4 * tile) under
    v5e's 16 MiB scoped-VMEM default (and trivially under v6e/v7x limits).
    """
    tr = (tile_budget_bytes // max(row_bytes, 1)) // 8 * 8
    tr = max(8, tr)
    return R if R <= tr else tr   # full-extent block or a multiple of 8


# ---------------------------------------------------------------------------
# Wrappers
# ---------------------------------------------------------------------------
def _layer_norm_packed(x, gamma, beta, *, eps, affine, tile_rows,
                       tile_budget_bytes):
    B, F = x.shape
    P = _LANES // F                      # samples per 128-lane row
    pad = (-B) % P
    Bp = B + pad
    xp = jnp.pad(x, ((0, pad), (0, 0))) if pad else x
    xp = xp.reshape(Bp // P, _LANES)     # free: (B, F) is row-major contiguous
    R = Bp // P

    TR = tile_rows if tile_rows is not None else _pick_tile_rows(
        R, _LANES * 4, tile_budget_bytes=tile_budget_bytes)
    TR = min(TR, R) if TR >= R else TR
    grid = (pl.cdiv(R, TR),)

    # Block-diagonal ones: seg[i, j] = 1 iff lanes i and j share a sample.
    lane = jnp.arange(_LANES)
    seg = (lane[:, None] // F == lane[None, :] // F).astype(jnp.float32)

    row_spec = pl.BlockSpec((TR, _LANES), lambda i: (i, 0))
    seg_spec = pl.BlockSpec((_LANES, _LANES), lambda i: (0, 0))   # resident
    param_spec = pl.BlockSpec((1, _LANES), lambda i: (0, 0))      # resident

    kernel = functools.partial(_packed_layernorm_kernel, eps=eps, n=F,
                               affine=affine)

    in_specs = [row_spec, seg_spec]
    args = [xp, seg]
    if affine:
        in_specs += [param_spec, param_spec]
        args += [jnp.tile(gamma.astype(jnp.float32), P).reshape(1, _LANES),
                 jnp.tile(beta.astype(jnp.float32), P).reshape(1, _LANES)]

    out = pl.pallas_call(
        kernel,
        out_shape=jax.ShapeDtypeStruct((R, _LANES), x.dtype),
        grid=grid,
        in_specs=in_specs,
        out_specs=row_spec,
        compiler_params=pltpu.CompilerParams(
            dimension_semantics=(pltpu.PARALLEL,)),
    )(*args)

    out = out.reshape(Bp, F)
    return out[:B] if pad else out


def _layer_norm_rows(x, gamma, beta, *, eps, affine, tile_rows,
                     tile_budget_bytes):
    B, F = x.shape
    TR = tile_rows if tile_rows is not None else _pick_tile_rows(
        B, F * 4, tile_budget_bytes=tile_budget_bytes)
    TR = min(TR, B) if TR >= B else TR
    grid = (pl.cdiv(B, TR),)

    row_spec = pl.BlockSpec((TR, F), lambda i: (i, 0))
    param_spec = pl.BlockSpec((1, F), lambda i: (0, 0))

    kernel = functools.partial(_rowtiled_layernorm_kernel, eps=eps,
                               affine=affine)

    in_specs = [row_spec]
    args = [x]
    if affine:
        in_specs += [param_spec, param_spec]
        args += [gamma.astype(jnp.float32).reshape(1, F),
                 beta.astype(jnp.float32).reshape(1, F)]

    return pl.pallas_call(
        kernel,
        out_shape=jax.ShapeDtypeStruct((B, F), x.dtype),
        grid=grid,
        in_specs=in_specs,
        out_specs=row_spec,
        compiler_params=pltpu.CompilerParams(
            dimension_semantics=(pltpu.PARALLEL,)),
    )(*args)


def layer_norm(x, gamma=None, beta=None, *, eps=1e-5, affine=True,
               tile_rows=None, tile_budget_bytes=2 << 20):
    """x: (B, F); gamma, beta: (F,). Matches the virtualTB LayerNorm module."""
    B, F = x.shape
    if F < 2:
        raise ValueError("unbiased std (ddof=1) needs num_features >= 2")
    if _LANES % F == 0:
        return _layer_norm_packed(x, gamma, beta, eps=eps, affine=affine,
                                  tile_rows=tile_rows,
                                  tile_budget_bytes=tile_budget_bytes)
    return _layer_norm_rows(x, gamma, beta, eps=eps, affine=affine,
                            tile_rows=tile_rows,
                            tile_budget_bytes=tile_budget_bytes)


# ---------------------------------------------------------------------------
# Pure-JAX reference (matches the PyTorch module)
# ---------------------------------------------------------------------------
def layer_norm_ref(x, gamma=None, beta=None, eps=1e-5, affine=True):
    mean = x.mean(axis=1, keepdims=True)
    std = jnp.sqrt(jnp.sum((x - mean) ** 2, axis=1, keepdims=True)
                   / (x.shape[1] - 1))
    y = (x - mean) / (std + eps)
    if affine:
        y = gamma[None, :] * y + beta[None, :]
    return y


if __name__ == "__main__":
    key = jax.random.PRNGKey(0)
    kx, kg, kx2, kx3, kg3 = jax.random.split(key, 5)

    # Small shapes consistent with the DDPG module usage (hidden width 32).
    B, F = 2, 32
    x = jax.random.normal(kx, (B, F), dtype=jnp.float32)
    # Parameter init matching __init__: gamma ~ U[0,1), beta = 0.
    gamma = jax.random.uniform(kg, (F,), dtype=jnp.float32)
    beta = jnp.zeros((F,), dtype=jnp.float32)

    y = jax.block_until_ready(layer_norm(x, gamma, beta, eps=1e-5, affine=True))
    y_ref = layer_norm_ref(x, gamma, beta, eps=1e-5, affine=True)
    assert jnp.allclose(y, y_ref, atol=1e-5, rtol=1e-5), "affine mismatch vs reference"

    # Multi-step lane-dense pipeline: padding tail + ragged grid tail + non-affine.
    B2 = 102                       # pads to 104 -> 26 packed rows, tile 8 -> grid 4
    x2 = jax.random.normal(kx2, (B2, F), dtype=jnp.float32)
    y2 = jax.block_until_ready(layer_norm(x2, gamma, beta, tile_rows=8))
    assert jnp.allclose(y2, layer_norm_ref(x2, gamma, beta), atol=1e-5, rtol=1e-5), \
        "tiled mismatch vs reference"

    y3 = jax.block_until_ready(layer_norm(x2, affine=False, tile_rows=8))
    assert jnp.allclose(y3, layer_norm_ref(x2, affine=False), atol=1e-5, rtol=1e-5), \
        "non-affine mismatch vs reference"

    # Generic fallback path (feature width that does not divide 128 lanes).
    F3 = 40
    x3 = jax.random.normal(kx3, (6, F3), dtype=jnp.float32)
    g3 = jax.random.uniform(kg3, (F3,), dtype=jnp.float32)
    b3 = jnp.zeros((F3,), dtype=jnp.float32)
    y4 = jax.block_until_ready(layer_norm(x3, g3, b3))
    assert jnp.allclose(y4, layer_norm_ref(x3, g3, b3), atol=1e-5, rtol=1e-5), \
        "fallback mismatch vs reference"

    print("KERNEL_OK")
</pallas_src>

<mosaic_0001>
module attributes {stable_mosaic.version = 11 : i64} {
  func.func @_packed_layernorm_kernel(%arg0: i32, %arg1: memref<1x128xf32, #tpu.memory_space<vmem>>, %arg2: memref<128x128xf32, #tpu.memory_space<vmem>>, %arg3: memref<1x128xf32, #tpu.memory_space<vmem>>, %arg4: memref<1x128xf32, #tpu.memory_space<vmem>>, %arg5: memref<1x128xf32, #tpu.memory_space<vmem>>) attributes {dimension_semantics = [#tpu.dimension_semantics<parallel>], iteration_bounds = array<i64: 1>, scalar_prefetch = 0 : i64, scratch_operands = 0 : i64, tpu.core_type = #tpu.core_type<tc>, window_params = [{transform_indices = @transform_0, window_bounds = array<i64: 1, 128>}, {pipeline_mode = #tpu.pipeline_mode<synchronous>, transform_indices = @transform_1, window_bounds = array<i64: 128, 128>}, {pipeline_mode = #tpu.pipeline_mode<synchronous>, transform_indices = @transform_2, window_bounds = array<i64: 1, 128>}, {pipeline_mode = #tpu.pipeline_mode<synchronous>, transform_indices = @transform_3, window_bounds = array<i64: 1, 128>}, {transform_indices = @transform_4, window_bounds = array<i64: 1, 128>}]} {
    %c0 = arith.constant 0 : index
    %c0_0 = arith.constant 0 : index
    %0 = vector.load %arg1[%c0, %c0_0] : memref<1x128xf32, #tpu.memory_space<vmem>>, vector<1x128xf32>
    %c0_1 = arith.constant 0 : index
    %c0_2 = arith.constant 0 : index
    %1 = vector.load %arg2[%c0_1, %c0_2] : memref<128x128xf32, #tpu.memory_space<vmem>>, vector<128x128xf32>
    %cst = arith.constant dense<0.000000e+00> : vector<1x128xf32>
    %2 = tpu.matmul %0, %1, %cst {dimension_numbers = #tpu.dot_dimension_numbers<[1], [0], [0], [1], [0, 0, 1, 1], [], []>, precision = #tpu.contract_precision<fp32>} : vector<1x128xf32>, vector<128x128xf32>, vector<1x128xf32> -> vector<1x128xf32>
    %cst_3 = arith.constant 3.125000e-02 : f32
    %3 = vector.broadcast %cst_3 : f32 to vector<1x128xf32>
    %4 = arith.mulf %2, %3 : vector<1x128xf32>
    %5 = arith.subf %0, %4 : vector<1x128xf32>
    %6 = arith.mulf %5, %5 : vector<1x128xf32>
    %cst_4 = arith.constant dense<0.000000e+00> : vector<1x128xf32>
    %7 = tpu.matmul %6, %1, %cst_4 {dimension_numbers = #tpu.dot_dimension_numbers<[1], [0], [0], [1], [0, 0, 1, 1], [], []>, precision = #tpu.contract_precision<fp32>} : vector<1x128xf32>, vector<128x128xf32>, vector<1x128xf32> -> vector<1x128xf32>
    %cst_5 = arith.constant 0.0322580636 : f32
    %8 = vector.broadcast %cst_5 : f32 to vector<1x128xf32>
    %9 = arith.mulf %7, %8 : vector<1x128xf32>
    %10 = math.sqrt %9 : vector<1x128xf32>
    %cst_6 = arith.constant 9.99999974E-6 : f32
    %11 = vector.broadcast %cst_6 : f32 to vector<1x128xf32>
    %12 = arith.addf %10, %11 : vector<1x128xf32>
    %13 = tpu.reciprocal %12 : vector<1x128xf32> -> vector<1x128xf32>
    %14 = arith.mulf %5, %13 : vector<1x128xf32>
    %c0_7 = arith.constant 0 : index
    %c0_8 = arith.constant 0 : index
    %15 = vector.load %arg3[%c0_7, %c0_8] : memref<1x128xf32, #tpu.memory_space<vmem>>, vector<1x128xf32>
    %16 = arith.mulf %15, %14 : vector<1x128xf32>
    %c0_9 = arith.constant 0 : index
    %c0_10 = arith.constant 0 : index
    %17 = vector.load %arg4[%c0_9, %c0_10] : memref<1x128xf32, #tpu.memory_space<vmem>>, vector<1x128xf32>
    %18 = arith.addf %16, %17 : vector<1x128xf32>
    %c0_11 = arith.constant 0 : index
    %c0_12 = arith.constant 0 : index
    %19 = vector.load %arg5[%c0_11, %c0_12] : memref<1x128xf32, #tpu.memory_space<vmem>>, vector<1x128xf32>
    tpu.vector_store %arg5[%c0_11, %c0_12], %18 {strides = array<i32>} : memref<1x128xf32, #tpu.memory_space<vmem>>, vector<1x128xf32>,
    return
  }
  func.func @transform_0(%arg0: i32) -> (i32, i32) {
    %c0_i32 = arith.constant 0 : i32
    %c0_i32_0 = arith.constant 0 : i32
    return %arg0, %c0_i32 : i32, i32
  }
  func.func @transform_1(%arg0: i32) -> (i32, i32) {
    %c0_i32 = arith.constant 0 : i32
    %c0_i32_0 = arith.constant 0 : i32
    %c0_i32_1 = arith.constant 0 : i32
    return %c0_i32, %c0_i32_0 : i32, i32
  }
  func.func @transform_2(%arg0: i32) -> (i32, i32) {
    %c0_i32 = arith.constant 0 : i32
    %c0_i32_0 = arith.constant 0 : i32
    %c0_i32_1 = arith.constant 0 : i32
    return %c0_i32, %c0_i32_0 : i32, i32
  }
  func.func @transform_3(%arg0: i32) -> (i32, i32) {
    %c0_i32 = arith.constant 0 : i32
    %c0_i32_0 = arith.constant 0 : i32
    %c0_i32_1 = arith.constant 0 : i32
    return %c0_i32, %c0_i32_0 : i32, i32
  }
  func.func @transform_4(%arg0: i32) -> (i32, i32) {
    %c0_i32 = arith.constant 0 : i32
    %c0_i32_0 = arith.constant 0 : i32
    return %arg0, %c0_i32 : i32, i32
  }
}

</mosaic_0001>

<bundles_post_ra>
// kernel: tpu_custom_call.1
= control target key start
LH: loop header
LB: loop body
LE: loop exit
PB: predicated region body
PF: predicated region fallthrough
CT: control target
= control target key end

     0   :  { %9 = vsyncpa [#allocation3], 0  ;;  %s2762_s0 = inlined_call_operand.hbm [shape: f32[1,128], index: 0, kind: input, shape index: {}]   ;;  %s2763_s1 = inlined_call_operand.hbm [shape: f32[128,128], index: 1, kind: input, shape index: {}]   ;;  %s2764_s2 = inlined_call_operand.vmem [shape: f32[1,128], index: 2, kind: input, shape index: {}]   ;;  %s2765_s3 = inlined_call_operand.vmem [shape: f32[1,128], index: 3, kind: input, shape index: {}]   ;;  %s2766_s4 = inlined_call_operand.hbm [shape: f32[1,128], index: 4, kind: output, shape index: {}]  }
   0x1   :  { %10 = vsyncpa [#allocation6], 0 }
   0x2   :  { %11 = vsyncpa [#allocation4], 0  ;;  %s2079_s15 = smov [#allocation2]   ;;  %s2080_s17 = smov [#allocation5]  }
   0x3   :  { %s18_s16 = sshll.u32 %s2079_s15, 4  ;;  %s27_s18 = sshll.u32 %s2080_s17, 4  ;;  %s19_s16 = int_to_ptr.vmem [resolvable:$true] %s18_s16  ;;  %s28_s18 = int_to_ptr.vmem [resolvable:$true] %s27_s18 }
   0x4   :  { %s2021_s19 = scalar_lea.vmem %s19_s16, 16  ;;  %s2025_s20 = scalar_lea.vmem %s19_s16, 32 }
   0x5   :  { %p2022_p0 = scmp.ne.s32.totalorder %s19_s16, %s2021_s19  ;;  %p2026_p1 = scmp.lt.s32.totalorder %s19_s16, %s19_s16 }
   0x6   :  { %p2027_p2 = scmp.lt.s32.totalorder %s2025_s20, %s2021_s19 }
   0x8   :  { %p2028_p3 = por %p2027_p2, %p2026_p1 }
   0xa   :  { %p2029_p4 = pnand %p2028_p3, %p2022_p0 }
   0xc   :  { %2032 = shalt.err (!%p2029_p4)
}
   0xd   :  { %21 = dma.hbm_to_vmem [thread:$0]  %s2762_s0, 16, %s19_s16, [#allocation3]  }
   0xe   :  { %s2041_s23 = scalar_lea.vmem %s28_s18, 2048  ;;  %p2046_p6 = scmp.lt.s32.totalorder %s28_s18, %s28_s18 }
   0xf   :  { %p2042_p5 = scmp.ne.s32.totalorder %s28_s18, %s2041_s23  ;;  %p2047_p7 = scmp.lt.s32.totalorder %s2041_s23, %s2041_s23 }
  0x11   :  { %p2048_p8 = por %p2047_p7, %p2046_p6 }
  0x13   :  { %p2049_p9 = pnand %p2048_p8, %p2042_p5 }
  0x15   :  { %2052 = shalt.err (!%p2049_p9)
}
  0x16   :  { %s2081_s24 = smov 128   ;;  %s2082_s25 = smov 8  }
  0x17   :  { %33 = dma.hbm_to_vmem [thread:$0]  %s2763_s1, 2048, %s28_s18, [#allocation6], %s2081_s24, %s2081_s24, %s2082_s25  }
  0x18   :  { %2073 = dma.done.wait [#allocation3], 16  }
  0x19   :  { %2074 = vsyncadd [#allocation3], 4294967280 }
  0x1a   :  { %2075 = dma.done.wait [#allocation6], 2048  }
  0x1b   :  { %2076 = vsyncadd [#allocation6], 4294965248  ;;  %v2779_v0 = vmov 0.0   ;;  %vm2084_vm0 = vmmov 0   ;;  %v60_v1 = vld [vmem:[#allocation5 + $0x78] sm:$0xff]  ;;  %v59_v2 = vld [vmem:[#allocation5 + $0x70] sm:$0xff] }
  0x1c   :  { %1582 = vmatprep.subr.mxu0 %v2779_v0  ;;  %1617 = vmatprep.subr.mxu1 %v2779_v0  ;;  %v58_v3 = vld [vmem:[#allocation5 + $0x68] sm:$0xff]  ;;  %v2123_v4 = vand.u32 4294901760, %v60_v1  ;;  %v2125_v5 = vand.u32 4294901760, %v59_v2  ;;  %v57_v7 = vld [vmem:[#allocation5 + $0x60] sm:$0xff]  ;;  %v56_v8 = vld [vmem:[#allocation5 + $0x58] sm:$0xff]  ;;  %s2085_s30 = smov [#allocation7]  }
  0x1d   :  { %1614 = vmatprep.mubr.msk.f32.mxu0 %vm2084_vm0, %v2779_v0  ;;  %1649 = vmatprep.mubr.msk.f32.mxu1 %vm2084_vm0, %v2779_v0  ;;  %v2127_v6 = vand.u32 4294901760, %v58_v3  ;;  %v55_v9 = vld [vmem:[#allocation5 + $0x50] sm:$0xff]  ;;  %v2129_v10 = vand.u32 4294901760, %v57_v7  ;;  %v2131_v11 = vand.u32 4294901760, %v56_v8  ;;  %v54_v13 = vld [vmem:[#allocation5 + $0x48] sm:$0xff]  ;;  %v53_v14 = vld [vmem:[#allocation5 + $0x40] sm:$0xff] }
  0x1e   :  { %v2133_v12 = vand.u32 4294901760, %v55_v9  ;;  %1583 = vmatpush3.msra.mxu0 %v2123_v4  ;;  %v2137_v15 = vsub.f32 %v60_v1, %v2123_v4  ;;  %v2140_v16 = vsub.f32 %v59_v2, %v2125_v5  ;;  %v2142_v17 = vand.u32 4294901760, %v54_v13  ;;  %v52_v19 = vld [vmem:[#allocation5 + $0x38] sm:$0xff]  ;;  %v51_v26 = vld [vmem:[#allocation5 + $0x30] sm:$0xff]  ;;  %v50_v36 = vld [vmem:[#allocation5 + $0x28] sm:$0xff]  ;;  %s1368_s5 = sshll.u32 %s2085_s30, 4  ;;  %s1369_s5 = int_to_ptr.vmem [resolvable:$true] %s1368_s5 }
  0x1f   :  { %v2145_v18 = vsub.f32 %v58_v3, %v2127_v6  ;;  %1584 = vmatprep.subr.mxu0 %v2779_v0  ;;  %v2149_v20 = vsub.f32 %v57_v7, %v2129_v10  ;;  %v2152_v21 = vsub.f32 %v56_v8, %v2131_v11  ;;  %v2164_v25 = vand.u32 4294901760, %v53_v14  ;;  %v49_v41 = vld [vmem:[#allocation5 + $0x20] sm:$0xff]  ;;  %v48_v49 = vld [vmem:[#allocation5 + $0x18] sm:$0xff]  ;;  %v47_v54 = vld [vmem:[#allocation5 + $0x10] sm:$0xff]  ;;  %s2053_s6 = scalar_lea.vmem %s1369_s5, 16  ;;  %s2057_s7 = scalar_lea.vmem %s1369_s5, 32 }
  0x20   :  { %1585 = vmatpush3.msra.mxu0 %v2125_v5  ;;  %v2156_v22 = vand.u32 4294901760, %v2137_v15  ;;  %v2159_v23 = vand.u32 4294901760, %v2140_v16  ;;  %v2170_v28 = vand.u32 4294901760, %v52_v19  ;;  %v2176_v30 = vsub.f32 %v55_v9, %v2133_v12  ;;  %v2223_v50 = vld [vmem:[#allocation2] sm:$0x1]  ;;  %v46_v60 = vld [vmem:[#allocation5 + $0x8] sm:$0xff]  ;;  %p2054_p10 = scmp.ne.s32.totalorder %s1369_s5, %s2053_s6  ;;  %p2058_p11 = scmp.lt.s32.totalorder %s1369_s5, %s1369_s5 }
  0x21   :  { %v2162_v24 = vand.u32 4294901760, %v2145_v18  ;;  %1586 = vmatprep.subr.mxu0 %v2779_v0  ;;  %v2168_v27 = vand.u32 4294901760, %v2149_v20  ;;  %v2173_v29 = vand.u32 4294901760, %v2152_v21  ;;  %v2186_v34 = vsub.f32 %v54_v13, %v2142_v17  ;;  %2781 = vst [vmem:[#allocation11_spill] sm:$0xff] %v2223_v50  ;;  %v45_v7 = vld [vmem:[#allocation5] sm:$0xff]  ;;  %p2059_p12 = scmp.lt.s32.totalorder %s2057_s7, %s2053_s6 }
  0x22   :  { %1587 = vmatpush3.msra.mxu0 %v2127_v6  ;;  %v156_v31 = vsub.f32 %v2137_v15, %v2156_v22  ;;  %v163_v32 = vsub.f32 %v2140_v16, %v2159_v23  ;;  %v2189_v35 = vand.u32 4294901760, %v51_v26  ;;  %v2199_v40 = vand.u32 4294901760, %v2176_v30 }
  0x23   :  { %v170_v33 = vsub.f32 %v2145_v18, %v2162_v24  ;;  %1588 = vmatprep.subr.mxu0 %v2779_v0  ;;  %v177_v39 = vsub.f32 %v2149_v20, %v2168_v27  ;;  %v184_v42 = vsub.f32 %v2152_v21, %v2173_v29  ;;  %v2205_v43 = vsub.f32 %v53_v14, %v2164_v25  ;;  %p2060_p13 = por %p2059_p12, %p2058_p11 }
  0x24   :  { %1589 = vmatpush3.msra.mxu0 %v2129_v10  ;;  %v2192_v37 = vand.u32 4294901760, %v156_v31  ;;  %v2194_v38 = vand.u32 4294901760, %v163_v32  ;;  %v2211_v45 = vand.u32 4294901760, %v50_v36  ;;  %v2214_v46 = vand.u32 4294901760, %v2186_v34 }
  0x25   :  { %1590 = vmatprep.subr.mxu0 %v2779_v0  ;;  %v2209_v44 = vand.u32 4294901760, %v170_v33  ;;  %v2217_v47 = vsub.f32 %v52_v19, %v2170_v28  ;;  %v2221_v48 = vand.u32 4294901760, %v49_v41  ;;  %v2227_v51 = vand.u32 4294901760, %v177_v39  ;;  %p2061_p0 = pnand %p2060_p13, %p2054_p10 }
  0x26   :  { %1591 = vmatpush3.msra.mxu0 %v2131_v11  ;;  %1618 = vmatpush3.msra.mxu1 %v2192_v37  ;;  %v191_v52 = vsub.f32 %v2176_v30, %v2199_v40  ;;  %v2232_v53 = vand.u32 4294901760, %v2205_v43  ;;  %v2235_v55 = vsub.f32 %v51_v26, %v2189_v35  ;;  %v2239_v56 = vand.u32 4294901760, %v184_v42 }
  0x27   :  { %1592 = vmatprep.subr.mxu0 %v2779_v0  ;;  %1619 = vmatprep.subr.mxu1 %v2779_v0  ;;  %2782 = vst [vmem:[#allocation12_spill] sm:$0xff] %v2227_v51  ;;  %v2242_v57 = vand.u32 4294901760, %v2217_v47  ;;  %v198_v58 = vsub.f32 %v2186_v34, %v2214_v46  ;;  %v2248_v59 = vand.u32 4294901760, %v48_v49  ;;  %v2251_v61 = vsub.f32 %v50_v36, %v2211_v45 }
  0x28   :  { %1593 = vmatpush3.msra.mxu0 %v2133_v12  ;;  %1620 = vmatpush3.msra.mxu1 %v2194_v38  ;;  %2783 = vst [vmem:[#allocation13_spill] sm:$0xff] %v2239_v56  ;;  %v2254_v62 = vand.u32 4294901760, %v2223_v50  ;;  %v2258_v63 = vand.u32 4294901760, %v47_v54  ;;  %v2262_v1 = vand.u32 4294901760, %v191_v52  ;;  %v205_v2 = vsub.f32 %v2205_v43, %v2232_v53 }
  0x29   :  { %1594 = vmatprep.subr.mxu0 %v2779_v0  ;;  %1621 = vmatprep.subr.mxu1 %v2779_v0  ;;  %v2267_v3 = vand.u32 4294901760, %v2235_v55  ;;  %v2270_v8 = vsub.f32 %v49_v41, %v2221_v48  ;;  %v212_v9 = vsub.f32 %v2217_v47, %v2242_v57  ;;  %v2276_v13 = vand.u32 4294901760, %v46_v60 }
  0x2a   :  { %1595 = vmatpush3.msra.mxu0 %v2142_v17  ;;  %1622 = vmatpush3.msra.mxu1 %v2209_v44  ;;  %2784 = vst [vmem:[#allocation14_spill] sm:$0xff] %v2262_v1  ;;  %v2280_v14 = vand.u32 4294901760, %v198_v58  ;;  %v2283_v19 = vand.u32 4294901760, %v2251_v61  ;;  %v2287_v26 = vsub.f32 %v2223_v50, %v2254_v62  ;;  %v2290_v31 = vsub.f32 %v48_v49, %v2248_v59 }
  0x2b   :  { %1596 = vmatprep.subr.mxu0 %v2779_v0  ;;  %1623 = vmatprep.subr.mxu1 %v2779_v0  ;;  %v2294_v32 = vand.u32 4294901760, %v45_v7  ;;  %v2298_v33 = vand.u32 4294901760, %v205_v2  ;;  %v219_v36 = vsub.f32 %v2235_v55, %v2267_v3  ;;  %v2303_v39 = vand.u32 4294901760, %v2270_v8 }
  0x2c   :  { %1597 = vmatpush3.msra.mxu0 %v2164_v25  ;;  %1624 = vmatpush3.msra.mxu1 %v2227_v51  ;;  %2785 = vst [vmem:[#allocation15_spill] sm:$0xff] %v2280_v14  ;;  %v2306_v41 = vsub.f32 %v47_v54, %v2258_v63  ;;  %v2310_v42 = vand.u32 4294901760, %v212_v9  ;;  %v226_v49 = vsub.f32 %v2251_v61, %v2283_v19  ;;  %v2318_v58 = vand.u32 4294901760, %v2290_v31 }
  0x2d   :  { %1598 = vmatprep.subr.mxu0 %v2779_v0  ;;  %1625 = vmatprep.subr.mxu1 %v2779_v0  ;;  %2786 = vst [vmem:[#allocation16_spill] sm:$0xff] %v2298_v33  ;;  %v2321_v54 = vsub.f32 %v46_v60, %v2276_v13  ;;  %v2327_v2 = vand.u32 4294901760, %v219_v36  ;;  %v233_v9 = vsub.f32 %v2270_v8, %v2303_v39  ;;  %v2791_v36 = vand.u32 4294901760, %v2287_v26 }
  0x2e   :  { %1599 = vmatpush3.msra.mxu0 %v2170_v28  ;;  %1626 = vmatpush3.msra.mxu1 %v2239_v56  ;;  %2787 = vst [vmem:[#allocation17_spill] sm:$0xff] %v2310_v42  ;;  %2788 = vst [vmem:[#allocation18_spill] sm:$0xff] %v2318_v58  ;;  %v2332_v52 = vand.u32 4294901760, %v2306_v41  ;;  %v2335_v50 = vsub.f32 %v45_v7, %v2294_v32  ;;  %v2341_v60 = vand.u32 4294901760, %v226_v49 }
  0x2f   :  { %1600 = vmatprep.subr.mxu0 %v2779_v0  ;;  %1627 = vmatprep.subr.mxu1 %v2779_v0  ;;  %2789 = vst [vmem:[#allocation19_spill] sm:$0xff] %v2327_v2  ;;  %v2349_v7 = vand.u32 4294901760, %v2321_v54  ;;  %v2355_v49 = vand.u32 4294901760, %v233_v9 }
  0x30   :  { %1601 = vmatpush3.msra.mxu0 %v2189_v35  ;;  %1628 = vmatpush3.msra.mxu1 %v2262_v1  ;;  %2790 = vst [vmem:[#allocation20_spill] sm:$0xff] %v2332_v52 }
  0x31   :  { %1602 = vmatprep.subr.mxu0 %v2779_v0  ;;  %1629 = vmatprep.subr.mxu1 %v2779_v0  ;;  %2792 = vst [vmem:[#allocation21_spill] sm:$0xff] %v2349_v7  ;;  %v254_v9 = vsub.f32 %v2321_v54, %v2349_v7 }
  0x32   :  { %1603 = vmatpush3.msra.mxu0 %v2211_v45  ;;  %1630 = vmatpush3.msra.mxu1 %v2280_v14  ;;  %v240_v14 = vsub.f32 %v2290_v31, %v2318_v58 }
  0x33   :  { %1604 = vmatprep.subr.mxu0 %v2779_v0  ;;  %1631 = vmatprep.subr.mxu1 %v2779_v0 }
  0x34   :  { %1605 = vmatpush3.msra.mxu0 %v2221_v48  ;;  %1632 = vmatpush3.msra.mxu1 %v2298_v33  ;;  %v145_v33 = vsub.f32 %v2287_v26, %v2791_v36  ;;  %v2360_v36 = vand.u32 4294901760, %v2335_v50  ;;  %v2366_v56 = vand.u32 4294901760, %v240_v14  ;;  %v2381_v14 = vand.u32 4294901760, %v254_v9 }
  0x35   :  { %1606 = vmatprep.subr.mxu0 %v2779_v0  ;;  %1633 = vmatprep.subr.mxu1 %v2779_v0 }
  0x36   :  { %1607 = vmatpush3.msra.mxu0 %v2248_v59  ;;  %1634 = vmatpush3.msra.mxu1 %v2310_v42  ;;  %v247_v42 = vsub.f32 %v2306_v41, %v2332_v52  ;;  %2793 = vst [vmem:[#allocation22_spill] sm:$0xff] %v2360_v36  ;;  %v146_v1 = vand.u32 4294901760, %v145_v33  ;;  %v261_v51 = vsub.f32 %v2335_v50, %v2360_v36 }
  0x37   :  { %1608 = vmatprep.subr.mxu0 %v2779_v0  ;;  %1635 = vmatprep.subr.mxu1 %v2779_v0 }
  0x38   :  { %1609 = vmatpush3.msra.mxu0 %v2258_v63  ;;  %1636 = vmatpush3.msra.mxu1 %v2327_v2  ;;  %v2374_v2 = vand.u32 4294901760, %v247_v42  ;;  %v2387_v33 = vand.u32 4294901760, %v261_v51  ;;  %v2794_v51 = vand.u32 4294901760, %v2287_v26  ;;  %v2801_v42 = vld [vmem:[#allocation19_spill] sm:$0xff] }
  0x39   :  { %1610 = vmatprep.subr.mxu0 %v2779_v0  ;;  %1637 = vmatprep.subr.mxu1 %v2779_v0 }
  0x3a   :  { %1611 = vmatpush3.msra.mxu0 %v2276_v13  ;;  %1638 = vmatpush3.msra.mxu1 %v2341_v60 }
  0x3b   :  { %1612 = vmatprep.subr.mxu0 %v2779_v0  ;;  %1639 = vmatprep.subr.mxu1 %v2779_v0 }
  0x3c   :  { %1613 = vmatpush3.msra.mxu0 %v2294_v32  ;;  %1640 = vmatpush3.msra.mxu1 %v2355_v49 }
  0x3d   :  { %1641 = vmatprep.subr.mxu1 %v2779_v0  ;;  %1652 = vmatprep.subr.mxu0 %v2779_v0 }
  0x3e   :  { %1615 = vmatmul.mubr.f32.vlgmr.msra.gmra.mxu0 %v146_v1  ;;  %1642 = vmatpush3.msra.mxu1 %v2366_v56  ;;  %v2799_v1 = vld [vmem:[#allocation16_spill] sm:$0xff] }
  0x3f   :  { %1653 = vmatpush3.msra.mxu0 %v2137_v15  ;;  %1643 = vmatprep.subr.mxu1 %v2779_v0 }
  0x40   :  { %1654 = vmatprep.subr.mxu0 %v2779_v0  ;;  %1644 = vmatpush3.msra.mxu1 %v2374_v2 }
  0x41   :  { %1655 = vmatpush3.msra.mxu0 %v2140_v16  ;;  %1645 = vmatprep.subr.mxu1 %v2779_v0 }
  0x42   :  { %1656 = vmatprep.subr.mxu0 %v2779_v0  ;;  %1646 = vmatpush3.msra.mxu1 %v2381_v14 }
  0x43   :  { %1657 = vmatpush3.msra.mxu0 %v2145_v18  ;;  %1647 = vmatprep.subr.mxu1 %v2779_v0 }
  0x44   :  { %1658 = vmatprep.subr.mxu0 %v2779_v0  ;;  %1648 = vmatpush3.msra.mxu1 %v2387_v33 }
  0x45   :  { %1659 = vmatpush3.msra.mxu0 %v2149_v20  ;;  %1650 = vmatmul.mubr.f32.vlgmr.msra.gmra.mxu1 %v2254_v62 }
  0x46   :  { %1660 = vmatprep.subr.mxu0 %v2779_v0  ;;  %1687 = vmatprep.subr.mxu1 %v2779_v0 }
  0x47   :  { %1661 = vmatpush3.msra.mxu0 %v2152_v21  ;;  %1688 = vmatpush3.msra.mxu1 %v2123_v4 }
  0x48   :  { %1662 = vmatprep.subr.mxu0 %v2779_v0  ;;  %1689 = vmatprep.subr.mxu1 %v2779_v0 }
  0x49   :  { %1663 = vmatpush3.msra.mxu0 %v2176_v30  ;;  %1690 = vmatpush3.msra.mxu1 %v2125_v5 }
  0x4a   :  { %1664 = vmatprep.subr.mxu0 %v2779_v0  ;;  %1691 = vmatprep.subr.mxu1 %v2779_v0 }
  0x4b   :  { %1665 = vmatpush3.msra.mxu0 %v2186_v34  ;;  %1692 = vmatpush3.msra.mxu1 %v2127_v6 }
  0x4c   :  { %1666 = vmatprep.subr.mxu0 %v2779_v0  ;;  %1693 = vmatprep.subr.mxu1 %v2779_v0 }
  0x4d   :  { %1667 = vmatpush3.msra.mxu0 %v2205_v43  ;;  %1694 = vmatpush3.msra.mxu1 %v2129_v10 }
  0x4e   :  { %1668 = vmatprep.subr.mxu0 %v2779_v0  ;;  %1695 = vmatprep.subr.mxu1 %v2779_v0 }
  0x4f   :  { %1669 = vmatpush3.msra.mxu0 %v2217_v47  ;;  %1696 = vmatpush3.msra.mxu1 %v2131_v11 }
  0x50   :  { %1670 = vmatprep.subr.mxu0 %v2779_v0  ;;  %1697 = vmatprep.subr.mxu1 %v2779_v0 }
  0x51   :  { %1671 = vmatpush3.msra.mxu0 %v2235_v55  ;;  %1698 = vmatpush3.msra.mxu1 %v2133_v12 }
  0x52   :  { %1672 = vmatprep.subr.mxu0 %v2779_v0  ;;  %1699 = vmatprep.subr.mxu1 %v2779_v0 }
  0x53   :  { %1673 = vmatpush3.msra.mxu0 %v2251_v61  ;;  %1700 = vmatpush3.msra.mxu1 %v2142_v17 }
  0x54   :  { %1674 = vmatprep.subr.mxu0 %v2779_v0  ;;  %1701 = vmatprep.subr.mxu1 %v2779_v0 }
  0x55   :  { %1675 = vmatpush3.msra.mxu0 %v2270_v8  ;;  %1702 = vmatpush3.msra.mxu1 %v2164_v25 }
  0x56   :  { %1676 = vmatprep.subr.mxu0 %v2779_v0  ;;  %1703 = vmatprep.subr.mxu1 %v2779_v0 }
  0x57   :  { %1677 = vmatpush3.msra.mxu0 %v2290_v31  ;;  %1704 = vmatpush3.msra.mxu1 %v2170_v28 }
  0x58   :  { %1678 = vmatprep.subr.mxu0 %v2779_v0  ;;  %1705 = vmatprep.subr.mxu1 %v2779_v0 }
  0x59   :  { %1679 = vmatpush3.msra.mxu0 %v2306_v41  ;;  %1706 = vmatpush3.msra.mxu1 %v2189_v35 }
  0x5a   :  { %1680 = vmatprep.subr.mxu0 %v2779_v0  ;;  %1707 = vmatprep.subr.mxu1 %v2779_v0 }
  0x5b   :  { %1681 = vmatpush3.msra.mxu0 %v2321_v54  ;;  %1708 = vmatpush3.msra.mxu1 %v2211_v45 }
  0x5c   :  { %1682 = vmatprep.subr.mxu0 %v2779_v0  ;;  %1709 = vmatprep.subr.mxu1 %v2779_v0 }
  0x5d   :  { %1683 = vmatpush3.msra.mxu0 %v2335_v50  ;;  %1684 = vmatprep.mubr.msk.f32.mxu0 %vm2084_vm0, %v2779_v0 }
  0x5e   :  { %1710 = vmatpush3.msra.mxu1 %v2221_v48  ;;  %1685 = vmatmul.mubr.f32.vlgmr.msra.gmra.mxu0 %v2287_v26  ;;  %v2800_v26 = vld [vmem:[#allocation17_spill] sm:$0xff] }
  0x5f   :  { %1711 = vmatprep.subr.mxu1 %v2779_v0  ;;  %1722 = vmatprep.subr.mxu0 %v2779_v0 }
  0x60   :  { %1712 = vmatpush3.msra.mxu1 %v2248_v59  ;;  %1723 = vmatpush3.msra.mxu0 %v2156_v22 }
  0x61   :  { %1713 = vmatprep.subr.mxu1 %v2779_v0  ;;  %1724 = vmatprep.subr.mxu0 %v2779_v0 }
  0x62   :  { %1714 = vmatpush3.msra.mxu1 %v2258_v63  ;;  %1725 = vmatpush3.msra.mxu0 %v2159_v23 }
  0x63   :  { %1715 = vmatprep.subr.mxu1 %v2779_v0  ;;  %1726 = vmatprep.subr.mxu0 %v2779_v0 }
  0x64   :  { %1716 = vmatpush3.msra.mxu1 %v2276_v13  ;;  %1727 = vmatpush3.msra.mxu0 %v2162_v24 }
  0x65   :  { %1717 = vmatprep.subr.mxu1 %v2779_v0  ;;  %1728 = vmatprep.subr.mxu0 %v2779_v0 }
  0x66   :  { %1718 = vmatpush3.msra.mxu1 %v2294_v32  ;;  %1719 = vmatprep.mubr.msk.f32.mxu1 %vm2084_vm0, %v2779_v0 }
  0x67   :  { %1729 = vmatpush3.msra.mxu0 %v2168_v27  ;;  %1720 = vmatmul.mubr.f32.vlgmr.msra.gmra.mxu1 %v2794_v51 }
  0x68   :  { %1730 = vmatprep.subr.mxu0 %v2779_v0  ;;  %1757 = vmatprep.subr.mxu1 %v2779_v0 }
  0x69   :  { %1731 = vmatpush3.msra.mxu0 %v2173_v29  ;;  %1758 = vmatpush3.msra.mxu1 %v2123_v4 }
  0x6a   :  { %1732 = vmatprep.subr.mxu0 %v2779_v0  ;;  %1759 = vmatprep.subr.mxu1 %v2779_v0 }
  0x6b   :  { %1733 = vmatpush3.msra.mxu0 %v2199_v40  ;;  %1760 = vmatpush3.msra.mxu1 %v2125_v5 }
  0x6c   :  { %1734 = vmatprep.subr.mxu0 %v2779_v0  ;;  %1761 = vmatprep.subr.mxu1 %v2779_v0 }
  0x6d   :  { %1735 = vmatpush3.msra.mxu0 %v2214_v46  ;;  %1762 = vmatpush3.msra.mxu1 %v2127_v6 }
  0x6e   :  { %1736 = vmatprep.subr.mxu0 %v2779_v0  ;;  %1763 = vmatprep.subr.mxu1 %v2779_v0 }
  0x6f   :  { %1737 = vmatpush3.msra.mxu0 %v2232_v53  ;;  %1764 = vmatpush3.msra.mxu1 %v2129_v10 }
  0x70   :  { %1738 = vmatprep.subr.mxu0 %v2779_v0  ;;  %1765 = vmatprep.subr.mxu1 %v2779_v0 }
  0x71   :  { %1739 = vmatpush3.msra.mxu0 %v2242_v57  ;;  %1766 = vmatpush3.msra.mxu1 %v2131_v11 }
  0x72   :  { %1740 = vmatprep.subr.mxu0 %v2779_v0  ;;  %1767 = vmatprep.subr.mxu1 %v2779_v0 }
  0x73   :  { %1741 = vmatpush3.msra.mxu0 %v2267_v3  ;;  %1768 = vmatpush3.msra.mxu1 %v2133_v12 }
  0x74   :  { %1742 = vmatprep.subr.mxu0 %v2779_v0  ;;  %1769 = vmatprep.subr.mxu1 %v2779_v0 }
  0x75   :  { %1743 = vmatpush3.msra.mxu0 %v2283_v19  ;;  %1770 = vmatpush3.msra.mxu1 %v2142_v17 }
  0x76   :  { %1744 = vmatprep.subr.mxu0 %v2779_v0  ;;  %1771 = vmatprep.subr.mxu1 %v2779_v0 }
  0x77   :  { %1745 = vmatpush3.msra.mxu0 %v2303_v39  ;;  %1772 = vmatpush3.msra.mxu1 %v2164_v25 }
  0x78   :  { %1746 = vmatprep.subr.mxu0 %v2779_v0  ;;  %1773 = vmatprep.subr.mxu1 %v2779_v0 }
  0x79   :  { %1747 = vmatpush3.msra.mxu0 %v2318_v58  ;;  %1774 = vmatpush3.msra.mxu1 %v2170_v28  ;;  %v2802_v58 = vld [vmem:[#allocation11_spill] sm:$0xff] }
  0x7a   :  { %1748 = vmatprep.subr.mxu0 %v2779_v0  ;;  %1775 = vmatprep.subr.mxu1 %v2779_v0 }
  0x7b   :  { %1749 = vmatpush3.msra.mxu0 %v2332_v52  ;;  %1776 = vmatpush3.msra.mxu1 %v2189_v35 }
  0x7c   :  { %1750 = vmatprep.subr.mxu0 %v2779_v0  ;;  %1777 = vmatprep.subr.mxu1 %v2779_v0 }
  0x7d   :  { %1751 = vmatpush3.msra.mxu0 %v2349_v7  ;;  %1778 = vmatpush3.msra.mxu1 %v2211_v45 }
  0x7e   :  { %1752 = vmatprep.subr.mxu0 %v2779_v0  ;;  %1779 = vmatprep.subr.mxu1 %v2779_v0 }
  0x7f   :  { %1753 = vmatpush3.msra.mxu0 %v2360_v36  ;;  %1754 = vmatprep.mubr.msk.f32.mxu0 %vm2084_vm0, %v2779_v0 }
  0x80   :  { %1780 = vmatpush3.msra.mxu1 %v2221_v48  ;;  %1755 = vmatmul.mubr.f32.vlgmr.msra.gmra.mxu0 %v2254_v62 }
  0x81   :  { %1781 = vmatprep.subr.mxu1 %v2779_v0  ;;  %1789 = vmatprep.mubr.msk.f32.mxu1 %vm2084_vm0, %v2779_v0 }
  0x82   :  { %1782 = vmatpush3.msra.mxu1 %v2248_v59  ;;  %1792 = vmatprep.subr.mxu0 %v2779_v0 }
  0x83   :  { %1783 = vmatprep.subr.mxu1 %v2779_v0  ;;  %1793 = vmatpush3.msra.mxu0 %v2123_v4 }
  0x84   :  { %1784 = vmatpush3.msra.mxu1 %v2258_v63  ;;  %1794 = vmatprep.subr.mxu0 %v2779_v0 }
  0x85   :  { %1785 = vmatprep.subr.mxu1 %v2779_v0  ;;  %1795 = vmatpush3.msra.mxu0 %v2125_v5 }
  0x86   :  { %1786 = vmatpush3.msra.mxu1 %v2276_v13  ;;  %1796 = vmatprep.subr.mxu0 %v2779_v0 }
  0x87   :  { %1787 = vmatprep.subr.mxu1 %v2779_v0  ;;  %1797 = vmatpush3.msra.mxu0 %v2127_v6 }
  0x88   :  { %1788 = vmatpush3.msra.mxu1 %v2294_v32  ;;  %1798 = vmatprep.subr.mxu0 %v2779_v0 }
  0x89   :  { %1790 = vmatmul.mubr.f32.vlgmr.msra.gmra.mxu1 %v2254_v62  ;;  %1827 = vmatprep.subr.mxu1 %v2779_v0  ;;  %v2798_v62 = vld [vmem:[#allocation15_spill] sm:$0xff] }
  0x8a   :  { %1828 = vmatpush3.msra.mxu1 %v2192_v37  ;;  %1799 = vmatpush3.msra.mxu0 %v2129_v10  ;;  %v2795_v37 = vld [vmem:[#allocation12_spill] sm:$0xff] }
  0x8b   :  { %1829 = vmatprep.subr.mxu1 %v2779_v0  ;;  %1800 = vmatprep.subr.mxu0 %v2779_v0 }
  0x8c   :  { %1830 = vmatpush3.msra.mxu1 %v2194_v38  ;;  %1801 = vmatpush3.msra.mxu0 %v2131_v11  ;;  %v2796_v38 = vld [vmem:[#allocation13_spill] sm:$0xff] }
  0x8d   :  { %1831 = vmatprep.subr.mxu1 %v2779_v0  ;;  %1802 = vmatprep.subr.mxu0 %v2779_v0 }
  0x8e   :  { %1832 = vmatpush3.msra.mxu1 %v2209_v44  ;;  %1803 = vmatpush3.msra.mxu0 %v2133_v12  ;;  %v2797_v44 = vld [vmem:[#allocation14_spill] sm:$0xff] }
  0x8f   :  { %1833 = vmatprep.subr.mxu1 %v2779_v0  ;;  %1804 = vmatprep.subr.mxu0 %v2779_v0 }
  0x90   :  { %1834 = vmatpush3.msra.mxu1 %v2795_v37  ;;  %1805 = vmatpush3.msra.mxu0 %v2142_v17 }
  0x91   :  { %1835 = vmatprep.subr.mxu1 %v2779_v0  ;;  %1806 = vmatprep.subr.mxu0 %v2779_v0 }
  0x92   :  { %1836 = vmatpush3.msra.mxu1 %v2796_v38  ;;  %1807 = vmatpush3.msra.mxu0 %v2164_v25 }
  0x93   :  { %1837 = vmatprep.subr.mxu1 %v2779_v0  ;;  %1808 = vmatprep.subr.mxu0 %v2779_v0 }
  0x94   :  { %1838 = vmatpush3.msra.mxu1 %v2797_v44  ;;  %1809 = vmatpush3.msra.mxu0 %v2170_v28 }
  0x95   :  { %1839 = vmatprep.subr.mxu1 %v2779_v0  ;;  %1810 = vmatprep.subr.mxu0 %v2779_v0 }
  0x96   :  { %1840 = vmatpush3.msra.mxu1 %v2798_v62  ;;  %1811 = vmatpush3.msra.mxu0 %v2189_v35 }
  0x97   :  { %1841 = vmatprep.subr.mxu1 %v2779_v0  ;;  %1812 = vmatprep.subr.mxu0 %v2779_v0 }
  0x98   :  { %1842 = vmatpush3.msra.mxu1 %v2799_v1  ;;  %1813 = vmatpush3.msra.mxu0 %v2211_v45 }
  0x99   :  { %1843 = vmatprep.subr.mxu1 %v2779_v0  ;;  %1814 = vmatprep.subr.mxu0 %v2779_v0 }
  0x9a   :  { %1844 = vmatpush3.msra.mxu1 %v2800_v26  ;;  %1815 = vmatpush3.msra.mxu0 %v2221_v48 }
  0x9b   :  { %1845 = vmatprep.subr.mxu1 %v2779_v0  ;;  %1816 = vmatprep.subr.mxu0 %v2779_v0 }
  0x9c   :  { %1846 = vmatpush3.msra.mxu1 %v2801_v42  ;;  %1859 = vmatprep.mubr.msk.f32.mxu1 %vm2084_vm0, %v2779_v0 }
  0x9d   :  { %1847 = vmatprep.subr.mxu1 %v2779_v0  ;;  %1817 = vmatpush3.msra.mxu0 %v2248_v59 }
  0x9e   :  { %1848 = vmatpush3.msra.mxu1 %v2341_v60  ;;  %1818 = vmatprep.subr.mxu0 %v2779_v0 }
  0x9f   :  { %1849 = vmatprep.subr.mxu1 %v2779_v0  ;;  %1819 = vmatpush3.msra.mxu0 %v2258_v63 }
  0xa0   :  { %1850 = vmatpush3.msra.mxu1 %v2355_v49  ;;  %1820 = vmatprep.subr.mxu0 %v2779_v0 }
  0xa1   :  { %1851 = vmatprep.subr.mxu1 %v2779_v0  ;;  %1821 = vmatpush3.msra.mxu0 %v2276_v13 }
  0xa2   :  { %1852 = vmatpush3.msra.mxu1 %v2366_v56  ;;  %1822 = vmatprep.subr.mxu0 %v2779_v0 }
  0xa3   :  { %1853 = vmatprep.subr.mxu1 %v2779_v0  ;;  %1823 = vmatpush3.msra.mxu0 %v2294_v32 }
  0xa4   :  { %1854 = vmatpush3.msra.mxu1 %v2374_v2  ;;  %1824 = vmatprep.mubr.msk.f32.mxu0 %vm2084_vm0, %v2779_v0 }
  0xa5   :  { %1855 = vmatprep.subr.mxu1 %v2779_v0  ;;  %1862 = vmatprep.subr.mxu0 %v2779_v0 }
  0xa6   :  { %1856 = vmatpush3.msra.mxu1 %v2381_v14 }
  0xa7   :  { %1857 = vmatprep.subr.mxu1 %v2779_v0 }
  0xa8   :  { %1858 = vmatpush3.msra.mxu1 %v2387_v33 }
  0xa9   :  { %1897 = vmatprep.subr.mxu1 %v2779_v0 }
  0xfe   :  { %v148_v56 = vpop.f32.mrf.mxu0 }
 0x100   :  { %v1616_v60 = vpop.f32.mrf.mxu0 }
 0x105   :  { %v299_v49 = vpop.f32.mrf.mxu1 }
 0x106   :  { %v300_v62 = vadd.f32 %v299_v49, %v148_v56  ;;  %v2803_v56 = vmov 0.0  }
 0x107   :  { %v1651_v9 = vpop.f32.mrf.mxu1 }
 0x11e   :  { %v403_v2 = vpop.f32.mrf.mxu0 }
 0x11f   :  { %v404_v26 = vadd.f32 %v403_v2, %v300_v62 }
 0x120   :  { %v1686_v51 = vpop.f32.mrf.mxu0 }
 0x127   :  { %v492_v37 = vpop.f32.mrf.mxu1 }
 0x128   :  { %v493_v42 = vadd.f32 %v492_v37, %v404_v26 }
 0x129   :  { %v1721_v38 = vpop.f32.mrf.mxu1 }
 0x140   :  { %v611_v44 = vpop.f32.mrf.mxu0 }
 0x141   :  { %v612_v14 = vadd.f32 %v611_v44, %v493_v42 }
 0x142   :  { %v1756_v1 = vpop.f32.mrf.mxu0 }
 0x149   :  { %v698_v36 = vpop.f32.mrf.mxu1 }
 0x14a   :  { %v699_v7 = vadd.f32 %v698_v36, %v612_v14 }
 0x14b   :  { %v1791_v52 = vpop.f32.mrf.mxu1 }
 0x14c   :  { %v702_v33 = vmul.f32 0.03125, %v699_v7 }
 0x14e   :  { %v2603_v0 = vsub.f32 %v2802_v58, %v702_v33 }
 0x150   :  { %v704_v60 = vmul.f32 %v2603_v0, %v2603_v0 }
 0x152   :  { %v2607_v9 = vand.u32 4294901760, %v704_v60 }
 0x154   :  { %v2610_v51 = vsub.f32 %v704_v60, %v2607_v9  ;;  %1860 = vmatmul.mubr.f32.vlgmr.msra.gmra.mxu1 %v2607_v9 }
 0x155   :  { %1898 = vmatpush3.msra.mxu1 %v2123_v4  ;;  %1929 = vmatprep.mubr.msk.f32.mxu1 %vm2084_vm0, %v2803_v56 }
 0x156   :  { %1899 = vmatprep.subr.mxu1 %v2803_v56  ;;  %v788_v52 = vand.u32 4294901760, %v2610_v51 }
 0x157   :  { %1900 = vmatpush3.msra.mxu1 %v2125_v5 }
 0x158   :  { %1901 = vmatprep.subr.mxu1 %v2803_v56  ;;  %v789_v58 = vsub.f32 %v2610_v51, %v788_v52 }
 0x159   :  { %1902 = vmatpush3.msra.mxu1 %v2127_v6 }
 0x15a   :  { %1903 = vmatprep.subr.mxu1 %v2803_v56  ;;  %v790_v7 = vand.u32 4294901760, %v789_v58 }
 0x15b   :  { %1904 = vmatpush3.msra.mxu1 %v2129_v10 }
 0x15c   :  { %1905 = vmatprep.subr.mxu1 %v2803_v56  ;;  %1825 = vmatmul.mubr.f32.vlgmr.msra.gmra.mxu0 %v790_v7 }
 0x15d   :  { %1863 = vmatpush3.msra.mxu0 %v2137_v15  ;;  %1906 = vmatpush3.msra.mxu1 %v2131_v11 }
 0x15e   :  { %1864 = vmatprep.subr.mxu0 %v2803_v56  ;;  %1907 = vmatprep.subr.mxu1 %v2803_v56 }
 0x15f   :  { %1865 = vmatpush3.msra.mxu0 %v2140_v16  ;;  %1908 = vmatpush3.msra.mxu1 %v2133_v12 }
 0x160   :  { %1866 = vmatprep.subr.mxu0 %v2803_v56  ;;  %1909 = vmatprep.subr.mxu1 %v2803_v56 }
 0x161   :  { %1867 = vmatpush3.msra.mxu0 %v2145_v18  ;;  %1910 = vmatpush3.msra.mxu1 %v2142_v17 }
 0x162   :  { %1868 = vmatprep.subr.mxu0 %v2803_v56  ;;  %1911 = vmatprep.subr.mxu1 %v2803_v56 }
 0x163   :  { %1869 = vmatpush3.msra.mxu0 %v2149_v20  ;;  %1912 = vmatpush3.msra.mxu1 %v2164_v25 }
 0x164   :  { %1870 = vmatprep.subr.mxu0 %v2803_v56  ;;  %1913 = vmatprep.subr.mxu1 %v2803_v56 }
 0x165   :  { %1871 = vmatpush3.msra.mxu0 %v2152_v21  ;;  %1914 = vmatpush3.msra.mxu1 %v2170_v28 }
 0x166   :  { %1872 = vmatprep.subr.mxu0 %v2803_v56  ;;  %1915 = vmatprep.subr.mxu1 %v2803_v56 }
 0x167   :  { %1873 = vmatpush3.msra.mxu0 %v2176_v30  ;;  %1916 = vmatpush3.msra.mxu1 %v2189_v35 }
 0x168   :  { %1874 = vmatprep.subr.mxu0 %v2803_v56  ;;  %1917 = vmatprep.subr.mxu1 %v2803_v56 }
 0x169   :  { %1875 = vmatpush3.msra.mxu0 %v2186_v34  ;;  %1918 = vmatpush3.msra.mxu1 %v2211_v45 }
 0x16a   :  { %1876 = vmatprep.subr.mxu0 %v2803_v56  ;;  %1919 = vmatprep.subr.mxu1 %v2803_v56 }
 0x16b   :  { %1877 = vmatpush3.msra.mxu0 %v2205_v43  ;;  %1920 = vmatpush3.msra.mxu1 %v2221_v48 }
 0x16c   :  { %1878 = vmatprep.subr.mxu0 %v2803_v56  ;;  %1921 = vmatprep.subr.mxu1 %v2803_v56 }
 0x16d   :  { %1879 = vmatpush3.msra.mxu0 %v2217_v47  ;;  %1922 = vmatpush3.msra.mxu1 %v2248_v59 }
 0x16e   :  { %1880 = vmatprep.subr.mxu0 %v2803_v56  ;;  %1923 = vmatprep.subr.mxu1 %v2803_v56 }
 0x16f   :  { %1881 = vmatpush3.msra.mxu0 %v2235_v55  ;;  %1924 = vmatpush3.msra.mxu1 %v2258_v63 }
 0x170   :  { %1882 = vmatprep.subr.mxu0 %v2803_v56  ;;  %1925 = vmatprep.subr.mxu1 %v2803_v56 }
 0x171   :  { %1883 = vmatpush3.msra.mxu0 %v2251_v61  ;;  %1926 = vmatpush3.msra.mxu1 %v2276_v13 }
 0x172   :  { %1884 = vmatprep.subr.mxu0 %v2803_v56  ;;  %1927 = vmatprep.subr.mxu1 %v2803_v56 }
 0x173   :  { %1885 = vmatpush3.msra.mxu0 %v2270_v8  ;;  %1928 = vmatpush3.msra.mxu1 %v2294_v32 }
 0x174   :  { %1886 = vmatprep.subr.mxu0 %v2803_v56  ;;  %1930 = vmatmul.mubr.f32.vlgmr.msra.gmra.mxu1 %v788_v52 }
 0x175   :  { %1967 = vmatprep.subr.mxu1 %v2803_v56  ;;  %1887 = vmatpush3.msra.mxu0 %v2290_v31 }
 0x176   :  { %1968 = vmatpush3.msra.mxu1 %v2123_v4  ;;  %1888 = vmatprep.subr.mxu0 %v2803_v56  ;;  %v2804_v4 = vld [vmem:[#allocation18_spill] sm:$0xff] }
 0x177   :  { %1969 = vmatprep.subr.mxu1 %v2803_v56  ;;  %1889 = vmatpush3.msra.mxu0 %v2306_v41 }
 0x178   :  { %1970 = vmatpush3.msra.mxu1 %v2125_v5  ;;  %1890 = vmatprep.subr.mxu0 %v2803_v56  ;;  %v2805_v5 = vld [vmem:[#allocation20_spill] sm:$0xff] }
 0x179   :  { %1971 = vmatprep.subr.mxu1 %v2803_v56  ;;  %1891 = vmatpush3.msra.mxu0 %v2321_v54 }
 0x17a   :  { %1972 = vmatpush3.msra.mxu1 %v2127_v6  ;;  %1892 = vmatprep.subr.mxu0 %v2803_v56  ;;  %v2806_v6 = vld [vmem:[#allocation21_spill] sm:$0xff] }
 0x17b   :  { %1973 = vmatprep.subr.mxu1 %v2803_v56  ;;  %1893 = vmatpush3.msra.mxu0 %v2335_v50 }
 0x17c   :  { %1894 = vmatprep.mubr.msk.f32.mxu0 %vm2084_vm0, %v2803_v56  ;;  %1974 = vmatpush3.msra.mxu1 %v2129_v10  ;;  %v2807_v10 = vld [vmem:[#allocation22_spill] sm:$0xff] }
 0x17d   :  { %1895 = vmatmul.mubr.f32.vlgmr.msra.gmra.mxu0 %v2610_v51  ;;  %1932 = vmatprep.subr.mxu0 %v2803_v56 }
 0x17e   :  { %1975 = vmatprep.subr.mxu1 %v2803_v56  ;;  %1933 = vmatpush3.msra.mxu0 %v2156_v22 }
 0x17f   :  { %1976 = vmatpush3.msra.mxu1 %v2131_v11  ;;  %1934 = vmatprep.subr.mxu0 %v2803_v56 }
 0x180   :  { %1977 = vmatprep.subr.mxu1 %v2803_v56  ;;  %1935 = vmatpush3.msra.mxu0 %v2159_v23 }
 0x181   :  { %1978 = vmatpush3.msra.mxu1 %v2133_v12  ;;  %1936 = vmatprep.subr.mxu0 %v2803_v56 }
 0x182   :  { %1979 = vmatprep.subr.mxu1 %v2803_v56  ;;  %1937 = vmatpush3.msra.mxu0 %v2162_v24 }
 0x183   :  { %1980 = vmatpush3.msra.mxu1 %v2142_v17  ;;  %1938 = vmatprep.subr.mxu0 %v2803_v56 }
 0x184   :  { %1981 = vmatprep.subr.mxu1 %v2803_v56  ;;  %1939 = vmatpush3.msra.mxu0 %v2168_v27 }
 0x185   :  { %1982 = vmatpush3.msra.mxu1 %v2164_v25  ;;  %1940 = vmatprep.subr.mxu0 %v2803_v56 }
 0x186   :  { %1983 = vmatprep.subr.mxu1 %v2803_v56  ;;  %1941 = vmatpush3.msra.mxu0 %v2173_v29 }
 0x187   :  { %1984 = vmatpush3.msra.mxu1 %v2170_v28  ;;  %1942 = vmatprep.subr.mxu0 %v2803_v56 }
 0x188   :  { %1985 = vmatprep.subr.mxu1 %v2803_v56  ;;  %1943 = vmatpush3.msra.mxu0 %v2199_v40 }
 0x189   :  { %1986 = vmatpush3.msra.mxu1 %v2189_v35  ;;  %1944 = vmatprep.subr.mxu0 %v2803_v56 }
 0x18a   :  { %1987 = vmatprep.subr.mxu1 %v2803_v56  ;;  %1945 = vmatpush3.msra.mxu0 %v2214_v46 }
 0x18b   :  { %1988 = vmatpush3.msra.mxu1 %v2211_v45  ;;  %1946 = vmatprep.subr.mxu0 %v2803_v56 }
 0x18c   :  { %1989 = vmatprep.subr.mxu1 %v2803_v56  ;;  %1947 = vmatpush3.msra.mxu0 %v2232_v53  ;;  %v1357_v53 = vld [vmem:[%s2764_s2] sm:$0x1] }
 0x18d   :  { %1990 = vmatpush3.msra.mxu1 %v2221_v48  ;;  %1948 = vmatprep.subr.mxu0 %v2803_v56 }
 0x18e   :  { %1991 = vmatprep.subr.mxu1 %v2803_v56  ;;  %1949 = vmatpush3.msra.mxu0 %v2242_v57  ;;  %v1359_v57 = vld [vmem:[%s2765_s3] sm:$0x1] }
 0x18f   :  { %1992 = vmatpush3.msra.mxu1 %v2248_v59  ;;  %1950 = vmatprep.subr.mxu0 %v2803_v56 }
 0x190   :  { %1993 = vmatprep.subr.mxu1 %v2803_v56  ;;  %1951 = vmatpush3.msra.mxu0 %v2267_v3 }
 0x191   :  { %1994 = vmatpush3.msra.mxu1 %v2258_v63  ;;  %1952 = vmatprep.subr.mxu0 %v2803_v56 }
 0x192   :  { %1995 = vmatprep.subr.mxu1 %v2803_v56  ;;  %1953 = vmatpush3.msra.mxu0 %v2283_v19 }
 0x193   :  { %1996 = vmatpush3.msra.mxu1 %v2276_v13  ;;  %1954 = vmatprep.subr.mxu0 %v2803_v56 }
 0x194   :  { %1997 = vmatprep.subr.mxu1 %v2803_v56  ;;  %1955 = vmatpush3.msra.mxu0 %v2303_v39 }
 0x195   :  { %1998 = vmatpush3.msra.mxu1 %v2294_v32  ;;  %1999 = vmatprep.mubr.msk.f32.mxu1 %vm2084_vm0, %v2803_v56 }
 0x196   :  { %1956 = vmatprep.subr.mxu0 %v2803_v56  ;;  %2000 = vmatmul.mubr.f32.vlgmr.msra.gmra.mxu1 %v2607_v9 }
 0x197   :  { %1957 = vmatpush3.msra.mxu0 %v2804_v4  ;;  %1964 = vmatprep.mubr.msk.f32.mxu0 %vm2084_vm0, %v2803_v56 }
 0x198   :  { %1958 = vmatprep.subr.mxu0 %v2803_v56 }
 0x199   :  { %1959 = vmatpush3.msra.mxu0 %v2805_v5 }
 0x19a   :  { %1960 = vmatprep.subr.mxu0 %v2803_v56 }
 0x19b   :  { %1961 = vmatpush3.msra.mxu0 %v2806_v6 }
 0x19c   :  { %1962 = vmatprep.subr.mxu0 %v2803_v56 }
 0x19d   :  { %1963 = vmatpush3.msra.mxu0 %v2807_v10 }
 0x19e   :  { %1965 = vmatmul.mubr.f32.vlgmr.msra.gmra.mxu0 %v2607_v9 }
 0x214   :  { %v943_v11 = vpop.f32.mrf.mxu1 }
 0x216   :  { %v1861_v12 = vpop.f32.mrf.mxu1 }
 0x21c   :  { %v792_v15 = vpop.f32.mrf.mxu0 }
 0x21d   :  { %v944_v23 = vadd.f32 %v943_v11, %v792_v15 }
 0x21e   :  { %v1826_v16 = vpop.f32.mrf.mxu0 }
 0x234   :  { %v1136_v17 = vpop.f32.mrf.mxu1 }
 0x236   :  { %v1931_v18 = vpop.f32.mrf.mxu1 }
 0x23d   :  { %v1047_v20 = vpop.f32.mrf.mxu0 }
 0x23e   :  { %v1048_v25 = vadd.f32 %v1047_v20, %v944_v23 }
 0x23f   :  { %v1896_v21 = vpop.f32.mrf.mxu0 }
 0x240   :  { %v1137_v27 = vadd.f32 %v1136_v17, %v1048_v25 }
 0x256   :  { %v1342_v22 = vpop.f32.mrf.mxu1 }
 0x258   :  { %v2001_v24 = vpop.f32.mrf.mxu1 }
 0x25e   :  { %v1255_v28 = vpop.f32.mrf.mxu0 }
 0x25f   :  { %v1256_v29 = vadd.f32 %v1255_v28, %v1137_v27 }
 0x260   :  { %v1966_v30 = vpop.f32.mrf.mxu0 }
 0x261   :  { %v1343_v34 = vadd.f32 %v1342_v22, %v1256_v29 }
 0x263   :  { %v1346_v35 = vmul.f32 0.032258064, %v1343_v34 }
 0x265   :  { %2009 = vrsqrt.f32 %v1346_v35  ;;  %vm1349_vm1 = vcmp.eq.f32.partialorder %v1346_v35, inf  ;;  %v1352_v45 = vand.u32 2147483648, %v1346_v35  ;;  %vm1351_vm2 = vcmp.eq.f32.partialorder %v1346_v35, 0.0 }
 0x272   :  { %v2010_v40 = vpop.eup %2009 }
 0x273   :  { %v1348_v43 = vmul.f32 %v2010_v40, %v1346_v35 }
 0x275   :  { %v1350_v46 = vsel %vm1349_vm1, %v1346_v35, %v1348_v43 }
 0x276   :  { %v1353_v47 = vsel %vm1351_vm2, %v1352_v45, %v1350_v46 }
 0x277   :  { %v1354_v48 = vadd.f32 1e-05, %v1353_v47 }
 0x279   :  { %2011 = vrcp.f32 %v1354_v48 }
 0x286   :  { %v2012_v50 = vpop.eup %2011 }
 0x287   :  { %v1356_v55 = vmul.f32 %v2012_v50, %v2603_v0 }
 0x289   :  { %v1358_v59 = vmul.f32 %v1357_v53, %v1356_v55 }
 0x28b   :  { %v1360_v61 = vadd.f32 %v1359_v57, %v1358_v59 }
 0x28d   :  { %1361 = vst [vmem:[#allocation7] sm:$0x1] %v1360_v61 }
 0x28e   :  { %2064 = shalt.err (!%p2061_p0)
}
 0x28f   :  { %1371 = dma.vmem_to_hbm [thread:$0]  %s1369_s5, 16, %s2766_s4, [#allocation4]  }
 0x290   :  { %2077 = dma.done.wait [#allocation4], 16  }
 0x291   :  { %2078 = vsyncadd [#allocation4], 4294967280 }
 0x292   :  { %1375 = vsyncpa [#allocation3], 1 }
 0x293   :  { %1376 = vsyncpa [#allocation6], 1 }
 0x294   :  { %1377 = vsyncpa [#allocation4], 1 }

</bundles_post_ra>
